<compile_context>
chip_gen: v6e
topology: v6e:2x2x1
jax: 0.10.0
libtpu: 0.0.40
codegen_flags: <defaults>
</compile_context>

<pallas_src>
import jax
import jax.numpy as jnp
from jax.experimental import pallas as pl
from jax.experimental.pallas import tpu as pltpu

_LANES = 128                 # TPU lane width (last-dim tile)
_TILE_BYTES = 4 << 20        # ~4 MiB per pipeline buffer (fits v5e/v6e/v7x)
_MIN_PALLAS_ELEMS = 1 << 18  # below ~1 MiB of f32, XLA's fused add wins


def _translate_kernel(x_ref, w_ref, o_ref):
    # x_ref: (TR, 128) VMEM tile of flattened points.
    # w_ref: (1, 128) resident interleaved weight pattern (broadcast over rows).
    # Body is one vld + one vadd + one vst per vreg; entirely hidden under DMA.
    o_ref[...] = x_ref[...] + w_ref[...]


def _round_up(a: int, b: int) -> int:
    return ((a + b - 1) // b) * b


def translate_points(x: jax.Array, weight: jax.Array) -> jax.Array:
    """x: (N, 2), weight: (2,) -> (N, 2), elementwise x + weight (broadcast)."""
    n, d = x.shape
    assert d == 2 and weight.shape == (d,)
    total = n * d

    # Fallback path: tiny inputs (launch overhead dominates), sizes that would
    # need a pad + trailing-slice pass (each a full extra HBM read+write), and
    # integer dtypes (PyTorch promotes int + float param -> float).
    if (total < _MIN_PALLAS_ELEMS
            or total % _LANES != 0
            or not jnp.issubdtype(x.dtype, jnp.floating)):
        if jnp.issubdtype(x.dtype, jnp.floating):
            return x + weight.astype(x.dtype)
        return x + weight  # integer x: promote like PyTorch

    itemsize = jnp.dtype(x.dtype).itemsize
    sublane = 8 * (4 // itemsize)          # f32: 8, bf16: 16, int8: 32
    rows = total // _LANES                 # exact: total % 128 == 0 here

    # ~4 MiB per buffer, rounded down to a sublane multiple.
    tr_max = max(sublane,
                 (_TILE_BYTES // (_LANES * itemsize)) // sublane * sublane)
    # Cap at ~rows/2 so the grid has >= 2 steps (keeps v7x's 2nd TC busy).
    tr = min(tr_max, _round_up(pl.cdiv(rows, 2), sublane))
    tr = max(tr, sublane)
    grid = pl.cdiv(rows, tr)               # ragged last block is masked by Pallas

    # Lane-dense flatten: row-major (N, 2) -> (x0, y0, x1, y1, ...). Since 128
    # is even, every 128-wide row starts on an x coordinate, so the weight
    # pattern is simply (wx, wy) tiled 64 times.
    w_row = jnp.tile(weight.astype(x.dtype), _LANES // d).reshape(1, _LANES)
    x2d = x.reshape(rows, _LANES)

    out2d = pl.pallas_call(
        _translate_kernel,
        out_shape=jax.ShapeDtypeStruct((rows, _LANES), x.dtype),
        grid_spec=pltpu.PrefetchScalarGridSpec(
            num_scalar_prefetch=0,
            grid=(grid,),
            in_specs=[
                pl.BlockSpec((tr, _LANES), lambda i: (i, 0)),
                # Constant index_map -> weight tile stays resident across steps.
                pl.BlockSpec((1, _LANES), lambda i: (0, 0)),
            ],
            out_specs=pl.BlockSpec((tr, _LANES), lambda i: (i, 0)),
        ),
        compiler_params=pltpu.CompilerParams(
            # Independent row blocks: shard across both TensorCores on v7x.
            dimension_semantics=("parallel",),
            vmem_limit_bytes=32 << 20,
        ),
    )(x2d, w_row)

    return out2d.reshape(n, d)


class MyLayerTranslationJAX:
    """Mirror of the PyTorch module: a 2-element translation parameter."""

    def __init__(self):
        # torch.nn.init.zeros_(self.weight) -> deterministic zero init.
        self.weight = jnp.zeros((2,), dtype=jnp.float32)

    def __call__(self, x: jax.Array) -> jax.Array:
        return translate_points(x, self.weight)


if __name__ == "__main__":
    key = jax.random.PRNGKey(0)
    k1, k2, k3, k4 = jax.random.split(key, 4)

    layer = MyLayerTranslationJAX()

    # Small, module-scale input: takes the plain-XLA fallback path.
    x_small = jax.random.normal(k1, (64, 2), dtype=jnp.float32)
    out_small = jax.block_until_ready(layer(x_small))
    assert out_small.shape == x_small.shape and out_small.dtype == x_small.dtype
    # Zero-initialized weight -> identity.
    assert jnp.allclose(out_small, x_small, atol=1e-6)

    w = jnp.array([1.5, -2.25], dtype=jnp.float32)

    # Larger 128-aligned cloud: exercises the Pallas kernel (2 grid steps).
    x_big = jax.random.normal(k2, (131072, 2), dtype=jnp.float32)
    out_big = jax.block_until_ready(translate_points(x_big, w))
    assert out_big.shape == x_big.shape and out_big.dtype == x_big.dtype
    assert jnp.allclose(out_big, x_big + w, atol=1e-6)

    # 128-aligned but ragged last block (rows not a multiple of tr).
    x_rag = jax.random.normal(k3, (131072 + 64, 2), dtype=jnp.float32)
    out_rag = jax.block_until_ready(translate_points(x_rag, w))
    assert jnp.allclose(out_rag, x_rag + w, atol=1e-6)

    # Unaligned size: falls back to plain XLA (no pad/slice passes).
    x_odd = jax.random.normal(k4, (1000, 2), dtype=jnp.float32)
    out_odd = jax.block_until_ready(translate_points(x_odd, w))
    assert jnp.allclose(out_odd, x_odd + w, atol=1e-6)

    print("KERNEL_OK")
</pallas_src>

<mosaic_0001>
module attributes {stable_mosaic.version = 11 : i64} {
  func.func @_translate_kernel(%arg0: i32, %arg1: memref<1024x128xf32, #tpu.memory_space<vmem>>, %arg2: memref<1x128xf32, #tpu.memory_space<vmem>>, %arg3: memref<1024x128xf32, #tpu.memory_space<vmem>>) attributes {dimension_semantics = [#tpu.dimension_semantics<parallel>], iteration_bounds = array<i64: 2>, scalar_prefetch = 0 : i64, scratch_operands = 0 : i64, tpu.core_type = #tpu.core_type<tc>, window_params = [{transform_indices = @transform_0, window_bounds = array<i64: 1024, 128>}, {pipeline_mode = #tpu.pipeline_mode<synchronous>, transform_indices = @transform_1, window_bounds = array<i64: 1, 128>}, {transform_indices = @transform_2, window_bounds = array<i64: 1024, 128>}]} {
    %c0 = arith.constant 0 : index
    %c0_0 = arith.constant 0 : index
    %0 = vector.load %arg1[%c0, %c0_0] : memref<1024x128xf32, #tpu.memory_space<vmem>>, vector<1024x128xf32>
    %c0_1 = arith.constant 0 : index
    %c0_2 = arith.constant 0 : index
    %1 = vector.load %arg2[%c0_1, %c0_2] : memref<1x128xf32, #tpu.memory_space<vmem>>, vector<1x128xf32>
    %2 = vector.broadcast %1 : vector<1x128xf32> to vector<1024x128xf32>
    %3 = arith.addf %0, %2 : vector<1024x128xf32>
    %c0_3 = arith.constant 0 : index
    %c0_4 = arith.constant 0 : index
    %4 = vector.load %arg3[%c0_3, %c0_4] : memref<1024x128xf32, #tpu.memory_space<vmem>>, vector<1024x128xf32>
    tpu.vector_store %arg3[%c0_3, %c0_4], %3 {strides = array<i32>} : memref<1024x128xf32, #tpu.memory_space<vmem>>, vector<1024x128xf32>,
    return
  }
  func.func @transform_0(%arg0: i32) -> (i32, i32) {
    %c0_i32 = arith.constant 0 : i32
    %c0_i32_0 = arith.constant 0 : i32
    return %arg0, %c0_i32 : i32, i32
  }
  func.func @transform_1(%arg0: i32) -> (i32, i32) {
    %c0_i32 = arith.constant 0 : i32
    %c0_i32_0 = arith.constant 0 : i32
    %c0_i32_1 = arith.constant 0 : i32
    return %c0_i32, %c0_i32_0 : i32, i32
  }
  func.func @transform_2(%arg0: i32) -> (i32, i32) {
    %c0_i32 = arith.constant 0 : i32
    %c0_i32_0 = arith.constant 0 : i32
    return %arg0, %c0_i32 : i32, i32
  }
}

</mosaic_0001>

<bundles_post_ra>
// kernel: tpu_custom_call.1
= control target key start
LH: loop header
LB: loop body
LE: loop exit
PB: predicated region body
PF: predicated region fallthrough
CT: control target
= control target key end

     0   :  { %7 = vsyncpa [#allocation3], 0  ;;  %s1376_s0 = inlined_call_operand.hbm [shape: f32[2048,128], index: 0, kind: input, shape index: {}]   ;;  %s1377_s1 = inlined_call_operand.vmem [shape: f32[1,128], index: 1, kind: input, shape index: {}]   ;;  %s1378_s2 = inlined_call_operand.hbm [shape: f32[2048,128], index: 2, kind: output, shape index: {}]  }
   0x1   :  { %9 = vsyncpa [#allocation3 + $0x1], 0 }
   0x2   :  { %10 = vsyncpa [#allocation4], 0 }
   0x3   :  { %12 = vsyncpa [#allocation4 + $0x1], 0  ;;  %s824_s9 = smov 0   ;;  %s826_s10 = smov 0  }
   0x4   :  { %s828_s11 = smov 0   ;;  %s830_s12 = smov 0  }
   0x5 LB: > { %s845_s13 = sadd.s32 4294967295, %s801_s12   ;;  %s642_s14 = sadd.s32 4294967294, %s801_s12   ;;  %s801_s12 = sphi %s830_s12, %s1393_s12   ;;  %s797_s11 = sphi %s828_s11, %s1392_s11   ;;  %s793_s10 = sphi %s826_s10, %s1391_s10   ;;  %s789_s9 = sphi %s824_s9, %s1390_s9  }
   0x6   : > { %s849_s15 = sadd.s32 1, %s801_s12   ;;  %s25_s16 = sadd.s32 1, %s797_s11 }
   0x7   : > { %s22_s17 = ssub.s32 %s801_s12, %s849_s15  ;;  %p32_p0 = scmp.ne.s32.totalorder %s797_s11, %s793_s10 }
   0x8   : > { %p23_p1 = scmp.eq.s32.totalorder %s22_s17, 0  ;;  %p33_p2 = scmp.eq.s32.totalorder %s801_s12, 0 }
   0x9   : > { %p38_p3 = scmp.ne.s32.totalorder %s793_s10, %s789_s9  ;;  %p39_p4 = scmp.eq.s32.totalorder %s845_s13, 0 }
   0xa   : > { %s861_s18 = scalar_select %p23_p1, %s797_s11, %s25_s16  }
   0xb   : > { %p863_p5 = por %p33_p2, %p32_p0  ;;  %p867_p6 = por %p39_p4, %p38_p3 }
   0xc   : > { %p83_p7 = scmp.eq.s32.totalorder %s845_s13, 1  ;;  %p89_p8 = scmp.eq.s32.totalorder %s642_s14, 1 }
   0xd   : > { %s1382_s20 = scalar_select %p867_p6, 1, 0 }
   0xe   : > { %p671_p10 = scmp.lt.s32.totalorder %s801_s12, 2  ;;  %p874_p11 = por %p83_p7, %p32_p0 }
   0xf   : > { %p878_p12 = por %p89_p8, %p38_p3  ;;  %s112_s23 = sand.u32 1, %s797_s11  }
  0x10   : > { %s1383_s21 = scalar_select %p874_p11, 1, 0 }
  0x11   : > { %s1384_s22 = scalar_select %p878_p12, 1, 0 }
  0x12   : > { %s657_s24 = sshll.u32 %s801_s12, 14  ;;  %s645_s25 = sshll.u32 %s112_s23, 10 }
  0x13   : > { %s887_s28 = scalar_lea.hbm %s1376_s0, %s657_s24  ;;  %s116_s29 = scalar_lea.vmem [#allocation2], %s645_s25 }
  0x14   : > { %s123_s30 = sshll.u32 %s116_s29, 4  ;;  %p891_p13 = pnand %p671_p10, %p863_p5  ;;  %s895_s30 = int_to_ptr.vmem [resolvable:$true] %s123_s30 }
  0x15   : > { %s897_s4 = scalar_lea.sflag [#allocation3], %s112_s23  ;;  %s709_s5 = scalar_lea.hbm %s887_s28, 16384 }
  0x16   : > { %p710_p0 = scmp.ne.s32.totalorder %s887_s28, %s709_s5  ;;  %p711_p1 = pneg %p891_p13 }
  0x17   : > { %s714_s8 = scalar_lea.hbm %s1376_s0, 32768  ;;  %p715_p4 = scmp.lt.s32.totalorder %s887_s28, %s1376_s0 }
  0x18   : > { %p712_p2 = pnand %p711_p1, %p710_p0  ;;  %p716_p5 = scmp.lt.s32.totalorder %s714_s8, %s709_s5 }
  0x1a   : > { %p713_p3 = pneg %p712_p2  ;;  %p717_p7 = por %p716_p5, %p715_p4 }
  0x1c   : > { %p718_p8 = pnand %p717_p7, %p713_p3 }
  0x1e   : > { %721 = shalt.err (!%p718_p8)
}
  0x1f   : > { %s722_s17 = scalar_lea.vmem %s895_s30, 16384  ;;  %s803_s19 = smov [#allocation2]  }
  0x20   : > { %p723_p10 = scmp.ne.s32.totalorder %s895_s30, %s722_s17  ;;  %s727_s23 = sshll.u32 %s803_s19, 4  ;;  %s728_s23 = int_to_ptr.vmem [resolvable:$false] %s727_s23 }
  0x21   : > { %s729_s24 = scalar_lea.vmem %s728_s23, 32768  ;;  %p730_p2 = scmp.lt.s32.totalorder %s895_s30, %s728_s23 }
  0x22   : > { %p725_p9 = pnand %p723_p10, %p711_p1  ;;  %p731_p12 = scmp.lt.s32.totalorder %s729_s24, %s722_s17 }
  0x24   : > { %p726_p0 = pneg %p725_p9  ;;  %p732_p11 = por %p731_p12, %p730_p2 }
  0x26   : > { %p733_p6 = pnand %p732_p11, %p726_p0 }
  0x28   : > { %736 = shalt.err (!%p733_p6)
}
  0x29   : > { %s804_s25 = smov 128   ;;  %s805_s26 = smov 8  }
  0x2a   : > { %666 = dma.hbm_to_vmem [thread:$0]  (!%p891_p13), %s887_s28, 16384, %s895_s30, %s897_s4, %s804_s25, %s804_s25, %s805_s26  }
  0x2b   : > { %p648_p9 = scmp.ge.s32.totalorder %s801_s12, 1  ;;  %p131_p1 = scmp.lt.s32.totalorder %s801_s12, 3 }
  0x2d   : > { %p132_p3 = pnand %p648_p9, %p131_p1 }
  0x2e   : > { %s921_s27 = sand.u32 (!%p132_p3), 1, %s793_s10   ;;  %p1386_p6 = scmp.ne.s32.totalorder (!%p132_p3), %s1382_s20, 0 }
  0x2f   : > { %135 = sbr.rel (%p132_p3) target bundleno = 134 (0x86), region = 28  ;;  %s649_s29 = sshll.u32 (!%p132_p3), %s921_s27, 10 }
  0x30   : > { %s138_s5 = scalar_lea.sflag (!%p132_p3), [#allocation3], %s921_s27  ;;  %s925_s6 = scalar_lea.vmem (!%p132_p3), [#allocation2], %s649_s29 }
  0x34   : > { %780 = dma.done.wait (%p1386_p6), %s138_s5, 16384  }
  0x35   : > { %782 = vsyncadd (%p1386_p6), %s138_s5, 4294950912  ;;  %v164_v0 = vld [vmem:[%s925_s6] sm:$0xff]  ;;  %v165_v2 = vld [vmem:[%s925_s6 + $0x8] sm:$0xff]  ;;  %s949_s20 = scalar_lea.vmem [#allocation5], %s649_s29  ;;  %s658_s3 = sshll.u32 %s845_s13, 14 }
  0x36   : > { %v935_v1 = vld [vmem:[%s1377_s1] ss:$0 sm:$0xff]  ;;  %v166_v5 = vld [vmem:[%s925_s6 + $0x10] sm:$0xff]  ;;  %v167_v6 = vld [vmem:[%s925_s6 + $0x18] sm:$0xff]  ;;  %s569_s4 = sshll.u32 %s949_s20, 4  ;;  %s1317_s14 = scalar_lea.hbm %s1378_s2, %s658_s3  ;;  %s1321_s4 = int_to_ptr.vmem [resolvable:$true] %s569_s4 }
  0x37   : > { %v299_v3 = vadd.f32 %v935_v1, %v164_v0  ;;  %v300_v4 = vadd.f32 %v935_v1, %v165_v2  ;;  %v168_v7 = vld [vmem:[%s925_s6 + $0x20] sm:$0xff]  ;;  %v301_v8 = vadd.f32 %v935_v1, %v166_v5  ;;  %v302_v9 = vadd.f32 %v935_v1, %v167_v6  ;;  %v169_v11 = vld [vmem:[%s925_s6 + $0x28] sm:$0xff]  ;;  %v170_v12 = vld [vmem:[%s925_s6 + $0x30] sm:$0xff]  ;;  %s556_s13 = scalar_lea.sflag [#allocation4], %s921_s27  ;;  %s737_s16 = scalar_lea.vmem %s1321_s4, 16384 }
  0x38   : > { %v303_v10 = vadd.f32 %v935_v1, %v168_v7  ;;  %v171_v13 = vld [vmem:[%s925_s6 + $0x38] sm:$0xff]  ;;  %v304_v14 = vadd.f32 %v935_v1, %v169_v11  ;;  %v305_v15 = vadd.f32 %v935_v1, %v170_v12  ;;  %v172_v17 = vld [vmem:[%s925_s6 + $0x40] sm:$0xff]  ;;  %v173_v18 = vld [vmem:[%s925_s6 + $0x48] sm:$0xff]  ;;  %p738_p11 = scmp.ne.s32.totalorder %s1321_s4, %s737_s16  ;;  %p1387_p12 = scmp.ne.s32.totalorder %s1383_s21, 0 }
  0x39   : > { %427 = vst [vmem:[%s949_s20] sm:$0xff] %v299_v3  ;;  %428 = vst [vmem:[%s949_s20 + $0x8] sm:$0xff] %v300_v4  ;;  %v306_v16 = vadd.f32 %v935_v1, %v171_v13  ;;  %v174_v19 = vld [vmem:[%s925_s6 + $0x50] sm:$0xff]  ;;  %v307_v20 = vadd.f32 %v935_v1, %v172_v17  ;;  %v308_v21 = vadd.f32 %v935_v1, %v173_v18  ;;  %v175_v23 = vld [vmem:[%s925_s6 + $0x58] sm:$0xff]  ;;  %s806_s17 = smov [#allocation5]  }
  0x3a   : > { %429 = vst [vmem:[%s949_s20 + $0x10] sm:$0xff] %v301_v8  ;;  %430 = vst [vmem:[%s949_s20 + $0x18] sm:$0xff] %v302_v9  ;;  %v309_v22 = vadd.f32 %v935_v1, %v174_v19  ;;  %v176_v24 = vld [vmem:[%s925_s6 + $0x60] sm:$0xff]  ;;  %v177_v25 = vld [vmem:[%s925_s6 + $0x68] sm:$0xff]  ;;  %v310_v26 = vadd.f32 %v935_v1, %v175_v23  ;;  %p739_p13 = pnand %p738_p11, %p1387_p12  ;;  %s741_s19 = sshll.u32 %s806_s17, 4  ;;  %s742_s19 = int_to_ptr.vmem [resolvable:$false] %s741_s19 }
  0x3b   : > { %431 = vst [vmem:[%s949_s20 + $0x20] sm:$0xff] %v303_v10  ;;  %432 = vst [vmem:[%s949_s20 + $0x28] sm:$0xff] %v304_v14  ;;  %v311_v27 = vadd.f32 %v935_v1, %v176_v24  ;;  %v312_v28 = vadd.f32 %v935_v1, %v177_v25  ;;  %v178_v29 = vld [vmem:[%s925_s6 + $0x70] sm:$0xff]  ;;  %v179_v30 = vld [vmem:[%s925_s6 + $0x78] sm:$0xff]  ;;  %s743_s23 = scalar_lea.vmem %s742_s19, 32768  ;;  %p744_p5 = scmp.lt.s32.totalorder %s1321_s4, %s742_s19 }
  0x3c   : > { %433 = vst [vmem:[%s949_s20 + $0x30] sm:$0xff] %v305_v15  ;;  %434 = vst [vmem:[%s949_s20 + $0x38] sm:$0xff] %v306_v16  ;;  %v180_v31 = vld [vmem:[%s925_s6 + $0x80] sm:$0xff]  ;;  %v313_v32 = vadd.f32 %v935_v1, %v178_v29  ;;  %v314_v33 = vadd.f32 %v935_v1, %v179_v30  ;;  %v181_v35 = vld [vmem:[%s925_s6 + $0x88] sm:$0xff]  ;;  %p740_p4 = pneg %p739_p13  ;;  %p745_p7 = scmp.lt.s32.totalorder %s743_s23, %s737_s16 }
  0x3d   : > { %435 = vst [vmem:[%s949_s20 + $0x40] sm:$0xff] %v307_v20  ;;  %436 = vst [vmem:[%s949_s20 + $0x48] sm:$0xff] %v308_v21  ;;  %v315_v34 = vadd.f32 %v935_v1, %v180_v31  ;;  %v182_v36 = vld [vmem:[%s925_s6 + $0x90] sm:$0xff]  ;;  %v183_v37 = vld [vmem:[%s925_s6 + $0x98] sm:$0xff]  ;;  %v316_v38 = vadd.f32 %v935_v1, %v181_v35 }
  0x3e   : > { %437 = vst [vmem:[%s949_s20 + $0x50] sm:$0xff] %v309_v22  ;;  %438 = vst [vmem:[%s949_s20 + $0x58] sm:$0xff] %v310_v26  ;;  %v317_v39 = vadd.f32 %v935_v1, %v182_v36  ;;  %v318_v40 = vadd.f32 %v935_v1, %v183_v37  ;;  %v184_v41 = vld [vmem:[%s925_s6 + $0xa0] sm:$0xff]  ;;  %v185_v42 = vld [vmem:[%s925_s6 + $0xa8] sm:$0xff]  ;;  %p746_p8 = por %p745_p7, %p744_p5 }
  0x3f   : > { %439 = vst [vmem:[%s949_s20 + $0x60] sm:$0xff] %v311_v27  ;;  %440 = vst [vmem:[%s949_s20 + $0x68] sm:$0xff] %v312_v28  ;;  %v186_v43 = vld [vmem:[%s925_s6 + $0xb0] sm:$0xff]  ;;  %v319_v44 = vadd.f32 %v935_v1, %v184_v41  ;;  %v320_v45 = vadd.f32 %v935_v1, %v185_v42  ;;  %v187_v47 = vld [vmem:[%s925_s6 + $0xb8] sm:$0xff] }
  0x40   : > { %441 = vst [vmem:[%s949_s20 + $0x70] sm:$0xff] %v313_v32  ;;  %442 = vst [vmem:[%s949_s20 + $0x78] sm:$0xff] %v314_v33  ;;  %v321_v46 = vadd.f32 %v935_v1, %v186_v43  ;;  %v188_v48 = vld [vmem:[%s925_s6 + $0xc0] sm:$0xff]  ;;  %v189_v49 = vld [vmem:[%s925_s6 + $0xc8] sm:$0xff]  ;;  %v322_v50 = vadd.f32 %v935_v1, %v187_v47  ;;  %p747_p10 = pnand %p746_p8, %p740_p4 }
  0x41   : > { %443 = vst [vmem:[%s949_s20 + $0x80] sm:$0xff] %v315_v34  ;;  %444 = vst [vmem:[%s949_s20 + $0x88] sm:$0xff] %v316_v38  ;;  %v323_v51 = vadd.f32 %v935_v1, %v188_v48  ;;  %v324_v52 = vadd.f32 %v935_v1, %v189_v49  ;;  %v190_v53 = vld [vmem:[%s925_s6 + $0xd0] sm:$0xff]  ;;  %v191_v54 = vld [vmem:[%s925_s6 + $0xd8] sm:$0xff] }
  0x42   : > { %445 = vst [vmem:[%s949_s20 + $0x90] sm:$0xff] %v317_v39  ;;  %446 = vst [vmem:[%s949_s20 + $0x98] sm:$0xff] %v318_v40  ;;  %v192_v55 = vld [vmem:[%s925_s6 + $0xe0] sm:$0xff]  ;;  %v325_v56 = vadd.f32 %v935_v1, %v190_v53  ;;  %v326_v57 = vadd.f32 %v935_v1, %v191_v54  ;;  %v193_v59 = vld [vmem:[%s925_s6 + $0xe8] sm:$0xff] }
  0x43   : > { %447 = vst [vmem:[%s949_s20 + $0xa0] sm:$0xff] %v319_v44  ;;  %448 = vst [vmem:[%s949_s20 + $0xa8] sm:$0xff] %v320_v45  ;;  %v327_v58 = vadd.f32 %v935_v1, %v192_v55  ;;  %v194_v60 = vld [vmem:[%s925_s6 + $0xf0] sm:$0xff]  ;;  %v195_v61 = vld [vmem:[%s925_s6 + $0xf8] sm:$0xff]  ;;  %v328_v62 = vadd.f32 %v935_v1, %v193_v59 }
  0x44   : > { %449 = vst [vmem:[%s949_s20 + $0xb0] sm:$0xff] %v321_v46  ;;  %450 = vst [vmem:[%s949_s20 + $0xb8] sm:$0xff] %v322_v50  ;;  %v329_v63 = vadd.f32 %v935_v1, %v194_v60  ;;  %v330_v0 = vadd.f32 %v935_v1, %v195_v61  ;;  %v196_v2 = vld [vmem:[%s925_s6 + $0x100] sm:$0xff]  ;;  %v197_v3 = vld [vmem:[%s925_s6 + $0x108] sm:$0xff] }
  0x45   : > { %451 = vst [vmem:[%s949_s20 + $0xc0] sm:$0xff] %v323_v51  ;;  %452 = vst [vmem:[%s949_s20 + $0xc8] sm:$0xff] %v324_v52  ;;  %v198_v4 = vld [vmem:[%s925_s6 + $0x110] sm:$0xff]  ;;  %v331_v5 = vadd.f32 %v935_v1, %v196_v2  ;;  %v332_v6 = vadd.f32 %v935_v1, %v197_v3  ;;  %v199_v8 = vld [vmem:[%s925_s6 + $0x118] sm:$0xff] }
  0x46   : > { %453 = vst [vmem:[%s949_s20 + $0xd0] sm:$0xff] %v325_v56  ;;  %454 = vst [vmem:[%s949_s20 + $0xd8] sm:$0xff] %v326_v57  ;;  %v333_v7 = vadd.f32 %v935_v1, %v198_v4  ;;  %v200_v9 = vld [vmem:[%s925_s6 + $0x120] sm:$0xff]  ;;  %v201_v10 = vld [vmem:[%s925_s6 + $0x128] sm:$0xff]  ;;  %v334_v11 = vadd.f32 %v935_v1, %v199_v8 }
  0x47   : > { %455 = vst [vmem:[%s949_s20 + $0xe0] sm:$0xff] %v327_v58  ;;  %456 = vst [vmem:[%s949_s20 + $0xe8] sm:$0xff] %v328_v62  ;;  %v335_v12 = vadd.f32 %v935_v1, %v200_v9  ;;  %v336_v13 = vadd.f32 %v935_v1, %v201_v10  ;;  %v202_v14 = vld [vmem:[%s925_s6 + $0x130] sm:$0xff]  ;;  %v203_v15 = vld [vmem:[%s925_s6 + $0x138] sm:$0xff] }
  0x48   : > { %457 = vst [vmem:[%s949_s20 + $0xf0] sm:$0xff] %v329_v63  ;;  %458 = vst [vmem:[%s949_s20 + $0xf8] sm:$0xff] %v330_v0  ;;  %v204_v16 = vld [vmem:[%s925_s6 + $0x140] sm:$0xff]  ;;  %v337_v17 = vadd.f32 %v935_v1, %v202_v14  ;;  %v338_v18 = vadd.f32 %v935_v1, %v203_v15  ;;  %v205_v20 = vld [vmem:[%s925_s6 + $0x148] sm:$0xff] }
  0x49   : > { %459 = vst [vmem:[%s949_s20 + $0x100] sm:$0xff] %v331_v5  ;;  %460 = vst [vmem:[%s949_s20 + $0x108] sm:$0xff] %v332_v6  ;;  %v339_v19 = vadd.f32 %v935_v1, %v204_v16  ;;  %v206_v21 = vld [vmem:[%s925_s6 + $0x150] sm:$0xff]  ;;  %v207_v22 = vld [vmem:[%s925_s6 + $0x158] sm:$0xff]  ;;  %v340_v23 = vadd.f32 %v935_v1, %v205_v20 }
  0x4a   : > { %461 = vst [vmem:[%s949_s20 + $0x110] sm:$0xff] %v333_v7  ;;  %462 = vst [vmem:[%s949_s20 + $0x118] sm:$0xff] %v334_v11  ;;  %v341_v24 = vadd.f32 %v935_v1, %v206_v21  ;;  %v342_v25 = vadd.f32 %v935_v1, %v207_v22  ;;  %v208_v26 = vld [vmem:[%s925_s6 + $0x160] sm:$0xff]  ;;  %v209_v27 = vld [vmem:[%s925_s6 + $0x168] sm:$0xff] }
  0x4b   : > { %463 = vst [vmem:[%s949_s20 + $0x120] sm:$0xff] %v335_v12  ;;  %464 = vst [vmem:[%s949_s20 + $0x128] sm:$0xff] %v336_v13  ;;  %v210_v28 = vld [vmem:[%s925_s6 + $0x170] sm:$0xff]  ;;  %v343_v29 = vadd.f32 %v935_v1, %v208_v26  ;;  %v344_v30 = vadd.f32 %v935_v1, %v209_v27  ;;  %v211_v32 = vld [vmem:[%s925_s6 + $0x178] sm:$0xff] }
  0x4c   : > { %465 = vst [vmem:[%s949_s20 + $0x130] sm:$0xff] %v337_v17  ;;  %466 = vst [vmem:[%s949_s20 + $0x138] sm:$0xff] %v338_v18  ;;  %v345_v31 = vadd.f32 %v935_v1, %v210_v28  ;;  %v212_v33 = vld [vmem:[%s925_s6 + $0x180] sm:$0xff]  ;;  %v213_v34 = vld [vmem:[%s925_s6 + $0x188] sm:$0xff]  ;;  %v346_v35 = vadd.f32 %v935_v1, %v211_v32 }
  0x4d   : > { %467 = vst [vmem:[%s949_s20 + $0x140] sm:$0xff] %v339_v19  ;;  %468 = vst [vmem:[%s949_s20 + $0x148] sm:$0xff] %v340_v23  ;;  %v347_v36 = vadd.f32 %v935_v1, %v212_v33  ;;  %v348_v37 = vadd.f32 %v935_v1, %v213_v34  ;;  %v214_v38 = vld [vmem:[%s925_s6 + $0x190] sm:$0xff]  ;;  %v215_v39 = vld [vmem:[%s925_s6 + $0x198] sm:$0xff] }
  0x4e   : > { %469 = vst [vmem:[%s949_s20 + $0x150] sm:$0xff] %v341_v24  ;;  %470 = vst [vmem:[%s949_s20 + $0x158] sm:$0xff] %v342_v25  ;;  %v216_v40 = vld [vmem:[%s925_s6 + $0x1a0] sm:$0xff]  ;;  %v349_v41 = vadd.f32 %v935_v1, %v214_v38  ;;  %v350_v42 = vadd.f32 %v935_v1, %v215_v39  ;;  %v217_v44 = vld [vmem:[%s925_s6 + $0x1a8] sm:$0xff] }
  0x4f   : > { %471 = vst [vmem:[%s949_s20 + $0x160] sm:$0xff] %v343_v29  ;;  %472 = vst [vmem:[%s949_s20 + $0x168] sm:$0xff] %v344_v30  ;;  %v351_v43 = vadd.f32 %v935_v1, %v216_v40  ;;  %v218_v45 = vld [vmem:[%s925_s6 + $0x1b0] sm:$0xff]  ;;  %v219_v46 = vld [vmem:[%s925_s6 + $0x1b8] sm:$0xff]  ;;  %v352_v47 = vadd.f32 %v935_v1, %v217_v44 }
  0x50   : > { %473 = vst [vmem:[%s949_s20 + $0x170] sm:$0xff] %v345_v31  ;;  %474 = vst [vmem:[%s949_s20 + $0x178] sm:$0xff] %v346_v35  ;;  %v353_v48 = vadd.f32 %v935_v1, %v218_v45  ;;  %v354_v49 = vadd.f32 %v935_v1, %v219_v46  ;;  %v220_v50 = vld [vmem:[%s925_s6 + $0x1c0] sm:$0xff]  ;;  %v221_v51 = vld [vmem:[%s925_s6 + $0x1c8] sm:$0xff] }
  0x51   : > { %475 = vst [vmem:[%s949_s20 + $0x180] sm:$0xff] %v347_v36  ;;  %476 = vst [vmem:[%s949_s20 + $0x188] sm:$0xff] %v348_v37  ;;  %v222_v52 = vld [vmem:[%s925_s6 + $0x1d0] sm:$0xff]  ;;  %v355_v53 = vadd.f32 %v935_v1, %v220_v50  ;;  %v356_v54 = vadd.f32 %v935_v1, %v221_v51  ;;  %v223_v56 = vld [vmem:[%s925_s6 + $0x1d8] sm:$0xff] }
  0x52   : > { %477 = vst [vmem:[%s949_s20 + $0x190] sm:$0xff] %v349_v41  ;;  %478 = vst [vmem:[%s949_s20 + $0x198] sm:$0xff] %v350_v42  ;;  %v357_v55 = vadd.f32 %v935_v1, %v222_v52  ;;  %v224_v57 = vld [vmem:[%s925_s6 + $0x1e0] sm:$0xff]  ;;  %v225_v58 = vld [vmem:[%s925_s6 + $0x1e8] sm:$0xff]  ;;  %v358_v59 = vadd.f32 %v935_v1, %v223_v56 }
  0x53   : > { %479 = vst [vmem:[%s949_s20 + $0x1a0] sm:$0xff] %v351_v43  ;;  %480 = vst [vmem:[%s949_s20 + $0x1a8] sm:$0xff] %v352_v47  ;;  %v359_v60 = vadd.f32 %v935_v1, %v224_v57  ;;  %v360_v61 = vadd.f32 %v935_v1, %v225_v58  ;;  %v226_v62 = vld [vmem:[%s925_s6 + $0x1f0] sm:$0xff]  ;;  %v227_v63 = vld [vmem:[%s925_s6 + $0x1f8] sm:$0xff] }
  0x54   : > { %481 = vst [vmem:[%s949_s20 + $0x1b0] sm:$0xff] %v353_v48  ;;  %482 = vst [vmem:[%s949_s20 + $0x1b8] sm:$0xff] %v354_v49  ;;  %v228_v0 = vld [vmem:[%s925_s6 + $0x200] sm:$0xff]  ;;  %v361_v2 = vadd.f32 %v935_v1, %v226_v62  ;;  %v362_v3 = vadd.f32 %v935_v1, %v227_v63  ;;  %v229_v5 = vld [vmem:[%s925_s6 + $0x208] sm:$0xff] }
  0x55   : > { %483 = vst [vmem:[%s949_s20 + $0x1c0] sm:$0xff] %v355_v53  ;;  %484 = vst [vmem:[%s949_s20 + $0x1c8] sm:$0xff] %v356_v54  ;;  %v363_v4 = vadd.f32 %v935_v1, %v228_v0  ;;  %v230_v6 = vld [vmem:[%s925_s6 + $0x210] sm:$0xff]  ;;  %v231_v7 = vld [vmem:[%s925_s6 + $0x218] sm:$0xff]  ;;  %v364_v8 = vadd.f32 %v935_v1, %v229_v5 }
  0x56   : > { %485 = vst [vmem:[%s949_s20 + $0x1d0] sm:$0xff] %v357_v55  ;;  %486 = vst [vmem:[%s949_s20 + $0x1d8] sm:$0xff] %v358_v59  ;;  %v365_v9 = vadd.f32 %v935_v1, %v230_v6  ;;  %v366_v10 = vadd.f32 %v935_v1, %v231_v7  ;;  %v232_v11 = vld [vmem:[%s925_s6 + $0x220] sm:$0xff]  ;;  %v233_v12 = vld [vmem:[%s925_s6 + $0x228] sm:$0xff] }
  0x57   : > { %487 = vst [vmem:[%s949_s20 + $0x1e0] sm:$0xff] %v359_v60  ;;  %488 = vst [vmem:[%s949_s20 + $0x1e8] sm:$0xff] %v360_v61  ;;  %v234_v13 = vld [vmem:[%s925_s6 + $0x230] sm:$0xff]  ;;  %v367_v14 = vadd.f32 %v935_v1, %v232_v11  ;;  %v368_v15 = vadd.f32 %v935_v1, %v233_v12  ;;  %v235_v17 = vld [vmem:[%s925_s6 + $0x238] sm:$0xff] }
  0x58   : > { %489 = vst [vmem:[%s949_s20 + $0x1f0] sm:$0xff] %v361_v2  ;;  %490 = vst [vmem:[%s949_s20 + $0x1f8] sm:$0xff] %v362_v3  ;;  %v369_v16 = vadd.f32 %v935_v1, %v234_v13  ;;  %v236_v18 = vld [vmem:[%s925_s6 + $0x240] sm:$0xff]  ;;  %v237_v19 = vld [vmem:[%s925_s6 + $0x248] sm:$0xff]  ;;  %v370_v20 = vadd.f32 %v935_v1, %v235_v17 }
  0x59   : > { %491 = vst [vmem:[%s949_s20 + $0x200] sm:$0xff] %v363_v4  ;;  %492 = vst [vmem:[%s949_s20 + $0x208] sm:$0xff] %v364_v8  ;;  %v371_v21 = vadd.f32 %v935_v1, %v236_v18  ;;  %v372_v22 = vadd.f32 %v935_v1, %v237_v19  ;;  %v238_v23 = vld [vmem:[%s925_s6 + $0x250] sm:$0xff]  ;;  %v239_v24 = vld [vmem:[%s925_s6 + $0x258] sm:$0xff] }
  0x5a   : > { %493 = vst [vmem:[%s949_s20 + $0x210] sm:$0xff] %v365_v9  ;;  %494 = vst [vmem:[%s949_s20 + $0x218] sm:$0xff] %v366_v10  ;;  %v240_v25 = vld [vmem:[%s925_s6 + $0x260] sm:$0xff]  ;;  %v373_v26 = vadd.f32 %v935_v1, %v238_v23  ;;  %v374_v27 = vadd.f32 %v935_v1, %v239_v24  ;;  %v241_v29 = vld [vmem:[%s925_s6 + $0x268] sm:$0xff] }
  0x5b   : > { %495 = vst [vmem:[%s949_s20 + $0x220] sm:$0xff] %v367_v14  ;;  %496 = vst [vmem:[%s949_s20 + $0x228] sm:$0xff] %v368_v15  ;;  %v375_v28 = vadd.f32 %v935_v1, %v240_v25  ;;  %v242_v30 = vld [vmem:[%s925_s6 + $0x270] sm:$0xff]  ;;  %v243_v31 = vld [vmem:[%s925_s6 + $0x278] sm:$0xff]  ;;  %v376_v32 = vadd.f32 %v935_v1, %v241_v29 }
  0x5c   : > { %497 = vst [vmem:[%s949_s20 + $0x230] sm:$0xff] %v369_v16  ;;  %498 = vst [vmem:[%s949_s20 + $0x238] sm:$0xff] %v370_v20  ;;  %v377_v33 = vadd.f32 %v935_v1, %v242_v30  ;;  %v378_v34 = vadd.f32 %v935_v1, %v243_v31  ;;  %v244_v35 = vld [vmem:[%s925_s6 + $0x280] sm:$0xff]  ;;  %v245_v36 = vld [vmem:[%s925_s6 + $0x288] sm:$0xff] }
  0x5d   : > { %499 = vst [vmem:[%s949_s20 + $0x240] sm:$0xff] %v371_v21  ;;  %500 = vst [vmem:[%s949_s20 + $0x248] sm:$0xff] %v372_v22  ;;  %v246_v37 = vld [vmem:[%s925_s6 + $0x290] sm:$0xff]  ;;  %v379_v38 = vadd.f32 %v935_v1, %v244_v35  ;;  %v380_v39 = vadd.f32 %v935_v1, %v245_v36  ;;  %v247_v41 = vld [vmem:[%s925_s6 + $0x298] sm:$0xff] }
  0x5e   : > { %501 = vst [vmem:[%s949_s20 + $0x250] sm:$0xff] %v373_v26  ;;  %502 = vst [vmem:[%s949_s20 + $0x258] sm:$0xff] %v374_v27  ;;  %v381_v40 = vadd.f32 %v935_v1, %v246_v37  ;;  %v248_v42 = vld [vmem:[%s925_s6 + $0x2a0] sm:$0xff]  ;;  %v249_v43 = vld [vmem:[%s925_s6 + $0x2a8] sm:$0xff]  ;;  %v382_v44 = vadd.f32 %v935_v1, %v247_v41 }
  0x5f   : > { %503 = vst [vmem:[%s949_s20 + $0x260] sm:$0xff] %v375_v28  ;;  %504 = vst [vmem:[%s949_s20 + $0x268] sm:$0xff] %v376_v32  ;;  %v383_v45 = vadd.f32 %v935_v1, %v248_v42  ;;  %v384_v46 = vadd.f32 %v935_v1, %v249_v43  ;;  %v250_v47 = vld [vmem:[%s925_s6 + $0x2b0] sm:$0xff]  ;;  %v251_v48 = vld [vmem:[%s925_s6 + $0x2b8] sm:$0xff] }
  0x60   : > { %505 = vst [vmem:[%s949_s20 + $0x270] sm:$0xff] %v377_v33  ;;  %506 = vst [vmem:[%s949_s20 + $0x278] sm:$0xff] %v378_v34  ;;  %v252_v49 = vld [vmem:[%s925_s6 + $0x2c0] sm:$0xff]  ;;  %v385_v50 = vadd.f32 %v935_v1, %v250_v47  ;;  %v386_v51 = vadd.f32 %v935_v1, %v251_v48  ;;  %v253_v53 = vld [vmem:[%s925_s6 + $0x2c8] sm:$0xff] }
  0x61   : > { %507 = vst [vmem:[%s949_s20 + $0x280] sm:$0xff] %v379_v38  ;;  %508 = vst [vmem:[%s949_s20 + $0x288] sm:$0xff] %v380_v39  ;;  %v387_v52 = vadd.f32 %v935_v1, %v252_v49  ;;  %v254_v54 = vld [vmem:[%s925_s6 + $0x2d0] sm:$0xff]  ;;  %v255_v55 = vld [vmem:[%s925_s6 + $0x2d8] sm:$0xff]  ;;  %v388_v56 = vadd.f32 %v935_v1, %v253_v53 }
  0x62   : > { %509 = vst [vmem:[%s949_s20 + $0x290] sm:$0xff] %v381_v40  ;;  %510 = vst [vmem:[%s949_s20 + $0x298] sm:$0xff] %v382_v44  ;;  %v389_v57 = vadd.f32 %v935_v1, %v254_v54  ;;  %v390_v58 = vadd.f32 %v935_v1, %v255_v55  ;;  %v256_v59 = vld [vmem:[%s925_s6 + $0x2e0] sm:$0xff]  ;;  %v257_v60 = vld [vmem:[%s925_s6 + $0x2e8] sm:$0xff] }
  0x63   : > { %511 = vst [vmem:[%s949_s20 + $0x2a0] sm:$0xff] %v383_v45  ;;  %512 = vst [vmem:[%s949_s20 + $0x2a8] sm:$0xff] %v384_v46  ;;  %v258_v61 = vld [vmem:[%s925_s6 + $0x2f0] sm:$0xff]  ;;  %v391_v62 = vadd.f32 %v935_v1, %v256_v59  ;;  %v392_v63 = vadd.f32 %v935_v1, %v257_v60  ;;  %v259_v2 = vld [vmem:[%s925_s6 + $0x2f8] sm:$0xff] }
  0x64   : > { %513 = vst [vmem:[%s949_s20 + $0x2b0] sm:$0xff] %v385_v50  ;;  %514 = vst [vmem:[%s949_s20 + $0x2b8] sm:$0xff] %v386_v51  ;;  %v393_v0 = vadd.f32 %v935_v1, %v258_v61  ;;  %v260_v3 = vld [vmem:[%s925_s6 + $0x300] sm:$0xff]  ;;  %v261_v4 = vld [vmem:[%s925_s6 + $0x308] sm:$0xff]  ;;  %v394_v5 = vadd.f32 %v935_v1, %v259_v2 }
  0x65   : > { %515 = vst [vmem:[%s949_s20 + $0x2c0] sm:$0xff] %v387_v52  ;;  %516 = vst [vmem:[%s949_s20 + $0x2c8] sm:$0xff] %v388_v56  ;;  %v395_v6 = vadd.f32 %v935_v1, %v260_v3  ;;  %v396_v7 = vadd.f32 %v935_v1, %v261_v4  ;;  %v262_v8 = vld [vmem:[%s925_s6 + $0x310] sm:$0xff]  ;;  %v263_v9 = vld [vmem:[%s925_s6 + $0x318] sm:$0xff] }
  0x66   : > { %517 = vst [vmem:[%s949_s20 + $0x2d0] sm:$0xff] %v389_v57  ;;  %518 = vst [vmem:[%s949_s20 + $0x2d8] sm:$0xff] %v390_v58  ;;  %v264_v10 = vld [vmem:[%s925_s6 + $0x320] sm:$0xff]  ;;  %v397_v11 = vadd.f32 %v935_v1, %v262_v8  ;;  %v398_v12 = vadd.f32 %v935_v1, %v263_v9  ;;  %v265_v14 = vld [vmem:[%s925_s6 + $0x328] sm:$0xff] }
  0x67   : > { %519 = vst [vmem:[%s949_s20 + $0x2e0] sm:$0xff] %v391_v62  ;;  %520 = vst [vmem:[%s949_s20 + $0x2e8] sm:$0xff] %v392_v63  ;;  %v399_v13 = vadd.f32 %v935_v1, %v264_v10  ;;  %v266_v15 = vld [vmem:[%s925_s6 + $0x330] sm:$0xff]  ;;  %v267_v16 = vld [vmem:[%s925_s6 + $0x338] sm:$0xff]  ;;  %v400_v17 = vadd.f32 %v935_v1, %v265_v14 }
  0x68   : > { %521 = vst [vmem:[%s949_s20 + $0x2f0] sm:$0xff] %v393_v0  ;;  %522 = vst [vmem:[%s949_s20 + $0x2f8] sm:$0xff] %v394_v5  ;;  %v401_v18 = vadd.f32 %v935_v1, %v266_v15  ;;  %v402_v19 = vadd.f32 %v935_v1, %v267_v16  ;;  %v268_v20 = vld [vmem:[%s925_s6 + $0x340] sm:$0xff]  ;;  %v269_v21 = vld [vmem:[%s925_s6 + $0x348] sm:$0xff] }
  0x69   : > { %523 = vst [vmem:[%s949_s20 + $0x300] sm:$0xff] %v395_v6  ;;  %524 = vst [vmem:[%s949_s20 + $0x308] sm:$0xff] %v396_v7  ;;  %v270_v22 = vld [vmem:[%s925_s6 + $0x350] sm:$0xff]  ;;  %v403_v23 = vadd.f32 %v935_v1, %v268_v20  ;;  %v404_v24 = vadd.f32 %v935_v1, %v269_v21  ;;  %v271_v26 = vld [vmem:[%s925_s6 + $0x358] sm:$0xff] }
  0x6a   : > { %525 = vst [vmem:[%s949_s20 + $0x310] sm:$0xff] %v397_v11  ;;  %526 = vst [vmem:[%s949_s20 + $0x318] sm:$0xff] %v398_v12  ;;  %v405_v25 = vadd.f32 %v935_v1, %v270_v22  ;;  %v272_v27 = vld [vmem:[%s925_s6 + $0x360] sm:$0xff]  ;;  %v273_v28 = vld [vmem:[%s925_s6 + $0x368] sm:$0xff]  ;;  %v406_v29 = vadd.f32 %v935_v1, %v271_v26 }
  0x6b   : > { %527 = vst [vmem:[%s949_s20 + $0x320] sm:$0xff] %v399_v13  ;;  %528 = vst [vmem:[%s949_s20 + $0x328] sm:$0xff] %v400_v17  ;;  %v407_v30 = vadd.f32 %v935_v1, %v272_v27  ;;  %v408_v31 = vadd.f32 %v935_v1, %v273_v28  ;;  %v274_v32 = vld [vmem:[%s925_s6 + $0x370] sm:$0xff]  ;;  %v275_v33 = vld [vmem:[%s925_s6 + $0x378] sm:$0xff] }
  0x6c   : > { %529 = vst [vmem:[%s949_s20 + $0x330] sm:$0xff] %v401_v18  ;;  %530 = vst [vmem:[%s949_s20 + $0x338] sm:$0xff] %v402_v19  ;;  %v276_v34 = vld [vmem:[%s925_s6 + $0x380] sm:$0xff]  ;;  %v409_v35 = vadd.f32 %v935_v1, %v274_v32  ;;  %v410_v36 = vadd.f32 %v935_v1, %v275_v33  ;;  %v277_v38 = vld [vmem:[%s925_s6 + $0x388] sm:$0xff] }
  0x6d   : > { %531 = vst [vmem:[%s949_s20 + $0x340] sm:$0xff] %v403_v23  ;;  %532 = vst [vmem:[%s949_s20 + $0x348] sm:$0xff] %v404_v24  ;;  %v411_v37 = vadd.f32 %v935_v1, %v276_v34  ;;  %v278_v39 = vld [vmem:[%s925_s6 + $0x390] sm:$0xff]  ;;  %v279_v40 = vld [vmem:[%s925_s6 + $0x398] sm:$0xff]  ;;  %v412_v41 = vadd.f32 %v935_v1, %v277_v38 }
  0x6e   : > { %533 = vst [vmem:[%s949_s20 + $0x350] sm:$0xff] %v405_v25  ;;  %534 = vst [vmem:[%s949_s20 + $0x358] sm:$0xff] %v406_v29  ;;  %v413_v42 = vadd.f32 %v935_v1, %v278_v39  ;;  %v414_v43 = vadd.f32 %v935_v1, %v279_v40  ;;  %v280_v44 = vld [vmem:[%s925_s6 + $0x3a0] sm:$0xff]  ;;  %v281_v45 = vld [vmem:[%s925_s6 + $0x3a8] sm:$0xff] }
  0x6f   : > { %535 = vst [vmem:[%s949_s20 + $0x360] sm:$0xff] %v407_v30  ;;  %536 = vst [vmem:[%s949_s20 + $0x368] sm:$0xff] %v408_v31  ;;  %v282_v46 = vld [vmem:[%s925_s6 + $0x3b0] sm:$0xff]  ;;  %v415_v47 = vadd.f32 %v935_v1, %v280_v44  ;;  %v416_v48 = vadd.f32 %v935_v1, %v281_v45  ;;  %v283_v50 = vld [vmem:[%s925_s6 + $0x3b8] sm:$0xff] }
  0x70   : > { %537 = vst [vmem:[%s949_s20 + $0x370] sm:$0xff] %v409_v35  ;;  %538 = vst [vmem:[%s949_s20 + $0x378] sm:$0xff] %v410_v36  ;;  %v417_v49 = vadd.f32 %v935_v1, %v282_v46  ;;  %v284_v51 = vld [vmem:[%s925_s6 + $0x3c0] sm:$0xff]  ;;  %v285_v52 = vld [vmem:[%s925_s6 + $0x3c8] sm:$0xff]  ;;  %v418_v53 = vadd.f32 %v935_v1, %v283_v50 }
  0x71   : > { %539 = vst [vmem:[%s949_s20 + $0x380] sm:$0xff] %v411_v37  ;;  %540 = vst [vmem:[%s949_s20 + $0x388] sm:$0xff] %v412_v41  ;;  %v419_v54 = vadd.f32 %v935_v1, %v284_v51  ;;  %v420_v55 = vadd.f32 %v935_v1, %v285_v52  ;;  %v286_v56 = vld [vmem:[%s925_s6 + $0x3d0] sm:$0xff]  ;;  %v287_v57 = vld [vmem:[%s925_s6 + $0x3d8] sm:$0xff] }
  0x72   : > { %541 = vst [vmem:[%s949_s20 + $0x390] sm:$0xff] %v413_v42  ;;  %542 = vst [vmem:[%s949_s20 + $0x398] sm:$0xff] %v414_v43  ;;  %v288_v58 = vld [vmem:[%s925_s6 + $0x3e0] sm:$0xff]  ;;  %v421_v59 = vadd.f32 %v935_v1, %v286_v56  ;;  %v422_v60 = vadd.f32 %v935_v1, %v287_v57  ;;  %v289_v62 = vld [vmem:[%s925_s6 + $0x3e8] sm:$0xff] }
  0x73   : > { %543 = vst [vmem:[%s949_s20 + $0x3a0] sm:$0xff] %v415_v47  ;;  %544 = vst [vmem:[%s949_s20 + $0x3a8] sm:$0xff] %v416_v48  ;;  %v423_v61 = vadd.f32 %v935_v1, %v288_v58  ;;  %v290_v63 = vld [vmem:[%s925_s6 + $0x3f0] sm:$0xff]  ;;  %v291_v0 = vld [vmem:[%s925_s6 + $0x3f8] sm:$0xff]  ;;  %v424_v2 = vadd.f32 %v935_v1, %v289_v62 }
  0x74   : > { %545 = vst [vmem:[%s949_s20 + $0x3b0] sm:$0xff] %v417_v49  ;;  %546 = vst [vmem:[%s949_s20 + $0x3b8] sm:$0xff] %v418_v53  ;;  %v425_v3 = vadd.f32 %v935_v1, %v290_v63  ;;  %v426_v4 = vadd.f32 %v935_v1, %v291_v0 }
  0x75   : > { %547 = vst [vmem:[%s949_s20 + $0x3c0] sm:$0xff] %v419_v54  ;;  %548 = vst [vmem:[%s949_s20 + $0x3c8] sm:$0xff] %v420_v55 }
  0x76   : > { %549 = vst [vmem:[%s949_s20 + $0x3d0] sm:$0xff] %v421_v59  ;;  %550 = vst [vmem:[%s949_s20 + $0x3d8] sm:$0xff] %v422_v60 }
  0x77   : > { %551 = vst [vmem:[%s949_s20 + $0x3e0] sm:$0xff] %v423_v61  ;;  %552 = vst [vmem:[%s949_s20 + $0x3e8] sm:$0xff] %v424_v2 }
  0x78   : > { %553 = vst [vmem:[%s949_s20 + $0x3f0] sm:$0xff] %v425_v3  ;;  %554 = vst [vmem:[%s949_s20 + $0x3f8] sm:$0xff] %v426_v4 }
  0x79   : > { %750 = shalt.err (!%p747_p10)
}
  0x7a   : > { %s751_s24 = scalar_lea.hbm %s1317_s14, 16384  ;;  %s755_s29 = scalar_lea.hbm %s1378_s2, 32768 }
  0x7b   : > { %p752_p0 = scmp.ne.s32.totalorder %s1317_s14, %s751_s24  ;;  %p756_p1 = scmp.lt.s32.totalorder %s1317_s14, %s1378_s2 }
  0x7c   : > { %p757_p3 = scmp.lt.s32.totalorder %s755_s29, %s751_s24 }
  0x7d   : > { %p753_p2 = pnand %p752_p0, %p1387_p12 }
  0x7e   : > { %p758_p6 = por %p757_p3, %p756_p1 }
  0x7f   : > { %p754_p9 = pneg %p753_p2 }
  0x81   : > { %p759_p11 = pnand %p758_p6, %p754_p9 }
  0x83   : > { %762 = shalt.err (!%p759_p11)
}
  0x84   : > { %s807_s28 = smov 128   ;;  %s808_s30 = smov 8  }
  0x85   : > { %661 = dma.vmem_to_hbm [thread:$0]  (%p1387_p12), %s1321_s4, 16384, %s1317_s14, %s556_s13, %s807_s28, %s807_s28, %s808_s30  }
  0x86 PF: > { %s584_s20 = sand.u32 1, %s789_s9   ;;  %p1388_p13 = scmp.ne.s32.totalorder %s1384_s22, 0 }
  0x87   : > { %p1389_p4 = scmp.ge.s32.totalorder %s801_s12, 2  ;;  %s585_s3 = scalar_lea.sflag [#allocation4], %s584_s20 }
  0x89   : > { %p668_p5 = pnand %p1389_p4, %p1388_p13 }
  0x8b   : > { %p669_p7 = pneg %p668_p5 }
  0x8d   : > { %784 = dma.done.wait (%p669_p7), %s585_s3, 16384  }
  0x8e   : > { %786 = vsyncadd (%p669_p7), %s585_s3, 4294950912  ;;  %p15_p8 = scmp.ge.s32.totalorder %s849_s15, 4   ;;  %s1390_s9 = smov %s793_s10 }
  0x8f   : > { %s1391_s10 = smov %s797_s11  ;;  %s1392_s11 = smov %s861_s18 }
  0x90   : > { %s1393_s12 = smov %s849_s15  ;;  %17 = sbr.rel (!%p15_p8) target bundleno = 5 (0x5), region = 73 }
  0x95   :  { %590 = vsyncpa [#allocation3], 1 }
  0x96   :  { %592 = vsyncpa [#allocation3 + $0x1], 1 }
  0x97   :  { %593 = vsyncpa [#allocation4], 1 }
  0x98   :  { %595 = vsyncpa [#allocation4 + $0x1], 1 }

</bundles_post_ra>
